<compile_context>
chip_gen: v7x
topology: tpu7x:2x2x1
jax: 0.10.0
libtpu: 0.0.40
codegen_flags: <defaults>
</compile_context>

<pallas_src>
import jax
import jax.numpy as jnp
from jax.experimental import pallas as pl
from jax.experimental.pallas import tpu as pltpu

IN_DIM = 10
HID_DIM = 20
OUT_DIM = 10
NUM_STATES = 5          # HMM tables exist in __init__ but are unused in forward
NUM_OUTPUTS = 10

LANES = 128
MAX_TILE_ROWS = 4096          # 4096 x 128 x 4 B = 2 MiB per output tile
_GOLDEN_I32 = -1640531527     # 0x9E3779B9 reinterpreted as int32


def _bits_to_randint(bits):
    """Map uniform 32-bit values to int32 in [0, NUM_OUTPUTS).

    Uses the top 24 bits (exact in f32) scaled by 10 * 2^-24 and truncated.
    The maximum product rounds to 9.999999046..., never 10.0, so no clamp is
    needed.  (Residual bucket bias ~3.6e-7, same order as a plain modulo.)
    """
    if bits.dtype != jnp.uint32:
        bits = pltpu.bitcast(bits, jnp.uint32)
    top24 = (bits >> jnp.uint32(8)).astype(jnp.int32)            # [0, 2^24)
    r = top24.astype(jnp.float32) * jnp.float32(NUM_OUTPUTS * (2.0 ** -24))
    return r.astype(jnp.int32)


def _randint_tpu_kernel(seed_ref, out_ref):
    # Mix program_id with a multiplicative hash so per-block PRNG streams are
    # well separated (adjacent integer seeds can correlate on some PRNGs).
    block_seed = seed_ref[0] ^ (pl.program_id(0) * jnp.int32(_GOLDEN_I32))
    pltpu.prng_seed(block_seed)
    bits = pltpu.prng_random_bits(out_ref.shape)
    out_ref[...] = _bits_to_randint(bits)


def _randint_bits_kernel(bits_ref, out_ref):
    out_ref[...] = _bits_to_randint(bits_ref[...])


def hybrid_forward(x, seed):
    """Equivalent of HybridHMMNN.forward(x): int32 vector (B,) uniform in [0,10).

    TODO(synk): fc1/relu/fc2 and the HMM transition/emission tables are dead
    code in the PyTorch forward (their results are discarded), so they are not
    computed here.  torch.randint returns int64; this returns int32.
    """
    B = x.shape[0]
    rows = pl.cdiv(B, LANES)

    # Keep >= 2 grid steps whenever rows allow it (so both v7x TensorCores get
    # work on the "parallel" axis); tiles are sublane-aligned (multiple of 8
    # rows) and capped at 2 MiB -- far inside scoped VMEM on v5e/v6e/v7x.
    half_rows = ((pl.cdiv(rows, 2) + 7) // 8) * 8
    tile_rows = max(8, min(MAX_TILE_ROWS, half_rows))
    num_tiles = pl.cdiv(rows, tile_rows)
    rows_pad = tile_rows * num_tiles

    out_shape = jax.ShapeDtypeStruct((rows_pad, LANES), jnp.int32)
    cost = pl.CostEstimate(flops=0, transcendentals=0,
                           bytes_accessed=rows_pad * LANES * 4)

    if jax.default_backend() == "tpu":
        seed_arr = jnp.asarray(seed, jnp.int32).reshape((1,))
        packed = pl.pallas_call(
            _randint_tpu_kernel,
            grid_spec=pltpu.PrefetchScalarGridSpec(
                num_scalar_prefetch=1,
                grid=(num_tiles,),
                in_specs=[],
                out_specs=pl.BlockSpec((tile_rows, LANES),
                                       lambda i, seed_ref: (i, 0)),
            ),
            out_shape=out_shape,
            compiler_params=pltpu.CompilerParams(
                dimension_semantics=("parallel",)),
            cost_estimate=cost,
        )(seed_arr)
    else:
        # Interpret / non-TPU fallback: the on-chip PRNG primitives have no
        # CPU lowering, so feed pre-generated bits through the same mapping.
        key = jax.random.PRNGKey(seed)
        bits = jax.random.bits(key, (rows_pad, LANES), jnp.uint32)
        packed = pl.pallas_call(
            _randint_bits_kernel,
            grid=(num_tiles,),
            in_specs=[pl.BlockSpec((tile_rows, LANES), lambda i: (i, 0))],
            out_specs=pl.BlockSpec((tile_rows, LANES), lambda i: (i, 0)),
            out_shape=out_shape,
            cost_estimate=cost,
        )(bits)

    return packed.reshape(-1)[:B]


if __name__ == "__main__":
    key = jax.random.PRNGKey(0)
    B = 2
    # Module input for shape fidelity (its MLP path is dead in forward()).
    x = jax.random.normal(key, (B, IN_DIM), jnp.float32)
    seed = jnp.int32(0)

    fwd = jax.jit(hybrid_forward)
    out = jax.block_until_ready(fwd(x, seed))

    assert out.shape == (B,)
    assert out.dtype == jnp.int32
    assert bool(jnp.all((out >= 0) & (out < NUM_OUTPUTS)))
    print("KERNEL_OK")
</pallas_src>

<mosaic_0001>
module attributes {stable_mosaic.version = 11 : i64} {
  func.func @_randint_bits_kernel(%arg0: i32, %arg1: memref<8x128xi32, #tpu.memory_space<vmem>>, %arg2: memref<8x128xi32, #tpu.memory_space<vmem>>) attributes {dimension_semantics = [#tpu.dimension_semantics<arbitrary>], iteration_bounds = array<i64: 1>, scalar_prefetch = 0 : i64, scratch_operands = 0 : i64, tpu.core_type = #tpu.core_type<tc>, window_params = [{transform_indices = @transform_0, window_bounds = array<i64: 8, 128>}, {transform_indices = @transform_1, window_bounds = array<i64: 8, 128>}]} {
    %c0 = arith.constant 0 : index
    %c0_0 = arith.constant 0 : index
    %0 = vector.load %arg1[%c0, %c0_0] : memref<8x128xi32, #tpu.memory_space<vmem>>, vector<8x128xi32>
    %c8_i32 = arith.constant 8 : i32
    %1 = vector.broadcast %c8_i32 : i32 to vector<8x128xi32>
    %2 = arith.shrui %0, %1 : vector<8x128xi32>
    %3 = arith.sitofp %2 : vector<8x128xi32> to vector<8x128xf32>
    %cst = arith.constant 5.96046448E-7 : f32
    %4 = vector.broadcast %cst : f32 to vector<8x128xf32>
    %5 = arith.mulf %3, %4 : vector<8x128xf32>
    %6 = arith.fptosi %5 : vector<8x128xf32> to vector<8x128xi32>
    %c0_1 = arith.constant 0 : index
    %c0_2 = arith.constant 0 : index
    %7 = vector.load %arg2[%c0_1, %c0_2] : memref<8x128xi32, #tpu.memory_space<vmem>>, vector<8x128xi32>
    tpu.vector_store %arg2[%c0_1, %c0_2], %6 {strides = array<i32>} : memref<8x128xi32, #tpu.memory_space<vmem>>, vector<8x128xi32>,
    return
  }
  func.func @transform_0(%arg0: i32) -> (i32, i32) {
    %c0_i32 = arith.constant 0 : i32
    %c0_i32_0 = arith.constant 0 : i32
    return %arg0, %c0_i32 : i32, i32
  }
  func.func @transform_1(%arg0: i32) -> (i32, i32) {
    %c0_i32 = arith.constant 0 : i32
    %c0_i32_0 = arith.constant 0 : i32
    return %arg0, %c0_i32 : i32, i32
  }
}

</mosaic_0001>

<bundles_post_ra>
// kernel: hybrid_forward.1
= control target key start
LH: loop header
LB: loop body
LE: loop exit
PB: predicated region body
PF: predicated region fallthrough
CT: control target
= control target key end

     0   :  { %s36_s0 = inlined_call_operand.vmem [shape: u32[8,128], index: 0, kind: input, shape index: {}]   ;;  %s37_s1 = inlined_call_operand.vmem [shape: s32[8,128], index: 1, kind: output, shape index: {}]  }
   0x1   :  { %v8_v0 = vld [vmem:[%s36_s0] sm:$0xff] }
   0x2   :  { %v9_v1 = vshrl.u32 %v8_v0, 8 }
   0x4   :  { %v10_v2 = vcvt.s32.f32 %v9_v1 }
   0x6   :  { %v11_v3 = vmul.f32 5.9604645e-07, %v10_v2 }
   0x8   :  { %v18_v4 = vtrunc.f32 %v11_v3 }
   0xa   :  { %v19_v5 = vcvt.f32.s32 %v18_v4 }
   0xc   :  { %13 = vst [vmem:[%s37_s1] sm:$0xff] %v19_v5 }

</bundles_post_ra>
